<compile_context>
chip_gen: v6e
topology: v6e:2x2x1
jax: 0.10.0
libtpu: 0.0.40
codegen_flags: <defaults>
</compile_context>

<pallas_src>
import jax
import jax.numpy as jnp
from jax.experimental import pallas as pl
from jax.experimental.pallas import tpu as pltpu


def _frelu_kernel(x_ref, o_ref):
    # relu(x) + relu(-x) == |x| for floating-point inputs; single VPU op.
    o_ref[...] = jnp.abs(x_ref[...])


def frelu(x: jax.Array) -> jax.Array:
    """FReLU forward. Accepts any-rank input (e.g. NCHW), returns same shape/dtype."""
    orig_shape = x.shape
    dtype = x.dtype
    total = x.size
    flat = x.reshape(-1)

    # Lane-dense width: the widest multiple of 128 that divides the element count
    # (no padding needed), else fall back to a fixed wide width with padding.
    cols = None
    for c in (2048, 1024, 512, 256, 128):
        if total % c == 0:
            cols = c
            break
    if cols is None:
        cols = 512 if total >= 512 else 128

    itemsize = jnp.dtype(dtype).itemsize

    # ~2 MiB per tile: large enough to reach ~85% of HBM roofline (measured on
    # v6e for elementwise ops), small enough that 2 double-buffered operands
    # (in + out) fit comfortably in every generation's scoped VMEM budget.
    target_tile_bytes = 2 * 1024 * 1024
    tr = max(8, target_tile_bytes // (cols * itemsize))
    tr = (tr // 8) * 8  # keep sublane-aligned for the (8, 128) tiling rule

    rows = -(-total // cols)  # ceil-div
    if rows <= tr:
        # Single row-tile: block shape == full array dims is always legal.
        tr = rows

    n_tiles = -(-rows // tr)
    padded = n_tiles * tr * cols
    if padded != total:
        flat = jnp.pad(flat, (0, padded - total))
    x2 = flat.reshape(n_tiles * tr, cols)

    out2 = pl.pallas_call(
        _frelu_kernel,
        out_shape=jax.ShapeDtypeStruct(x2.shape, dtype),
        grid=(n_tiles,),
        in_specs=[pl.BlockSpec((tr, cols), lambda i: (i, 0))],
        out_specs=pl.BlockSpec((tr, cols), lambda i: (i, 0)),
        compiler_params=pltpu.CompilerParams(
            dimension_semantics=("parallel",),
        ),
    )(x2)

    out = out2.reshape(-1)
    if padded != total:
        out = out[:total]
    return out.reshape(orig_shape)


if __name__ == "__main__":
    key = jax.random.PRNGKey(0)
    # NCHW input, small shape consistent with a conv-style module input.
    x = jax.random.normal(key, (2, 4, 16, 16), dtype=jnp.float32)

    out = frelu(x)
    out = jax.block_until_ready(out)

    # correctness check against pure-JAX reference: relu(x) + relu(-x)
    ref = jnp.maximum(x, 0.0) + jnp.maximum(-x, 0.0)
    assert out.shape == x.shape and out.dtype == x.dtype
    assert jnp.allclose(out, ref), "FReLU kernel mismatch vs reference"

    print("KERNEL_OK")
</pallas_src>

<mosaic_0001>
module attributes {stable_mosaic.version = 11 : i64} {
  func.func @_frelu_kernel(%arg0: i32, %arg1: memref<1x2048xf32, #tpu.memory_space<vmem>>, %arg2: memref<1x2048xf32, #tpu.memory_space<vmem>>) attributes {dimension_semantics = [#tpu.dimension_semantics<parallel>], iteration_bounds = array<i64: 1>, scalar_prefetch = 0 : i64, scratch_operands = 0 : i64, tpu.core_type = #tpu.core_type<tc>, window_params = [{transform_indices = @transform_0, window_bounds = array<i64: 1, 2048>}, {transform_indices = @transform_1, window_bounds = array<i64: 1, 2048>}]} {
    %c0 = arith.constant 0 : index
    %c0_0 = arith.constant 0 : index
    %0 = vector.load %arg1[%c0, %c0_0] : memref<1x2048xf32, #tpu.memory_space<vmem>>, vector<1x2048xf32>
    %1 = math.absf %0 : vector<1x2048xf32>
    %c0_1 = arith.constant 0 : index
    %c0_2 = arith.constant 0 : index
    %2 = vector.load %arg2[%c0_1, %c0_2] : memref<1x2048xf32, #tpu.memory_space<vmem>>, vector<1x2048xf32>
    tpu.vector_store %arg2[%c0_1, %c0_2], %1 {strides = array<i32>} : memref<1x2048xf32, #tpu.memory_space<vmem>>, vector<1x2048xf32>,
    return
  }
  func.func @transform_0(%arg0: i32) -> (i32, i32) {
    %c0_i32 = arith.constant 0 : i32
    %c0_i32_0 = arith.constant 0 : i32
    return %arg0, %c0_i32 : i32, i32
  }
  func.func @transform_1(%arg0: i32) -> (i32, i32) {
    %c0_i32 = arith.constant 0 : i32
    %c0_i32_0 = arith.constant 0 : i32
    return %arg0, %c0_i32 : i32, i32
  }
}

</mosaic_0001>

<bundles_post_ra>
// kernel: tpu_custom_call.1
= control target key start
LH: loop header
LB: loop body
LE: loop exit
PB: predicated region body
PF: predicated region fallthrough
CT: control target
= control target key end

     0   :  { %6 = vsyncpa [#allocation3], 0  ;;  %s106_s0 = inlined_call_operand.hbm [shape: f32[1,2048], index: 0, kind: input, shape index: {}]   ;;  %s107_s1 = inlined_call_operand.hbm [shape: f32[1,2048], index: 1, kind: output, shape index: {}]  }
   0x1   :  { %7 = vsyncpa [#allocation4], 0  ;;  %s88_s6 = smov [#allocation2]  }
   0x2   :  { %s14_s7 = sshll.u32 %s88_s6, 4  ;;  %s15_s7 = int_to_ptr.vmem [resolvable:$true] %s14_s7 }
   0x3   :  { %s52_s8 = scalar_lea.vmem %s15_s7, 256  ;;  %p57_p1 = scmp.lt.s32.totalorder %s15_s7, %s15_s7 }
   0x4   :  { %p53_p0 = scmp.ne.s32.totalorder %s15_s7, %s52_s8  ;;  %p58_p2 = scmp.lt.s32.totalorder %s52_s8, %s52_s8 }
   0x6   :  { %p59_p3 = por %p58_p2, %p57_p1 }
   0x8   :  { %p60_p4 = pnand %p59_p3, %p53_p0 }
   0xa   :  { %63 = shalt.err (!%p60_p4)
}
   0xb   :  { %17 = dma.hbm_to_vmem [thread:$0]  %s106_s0, 256, %s15_s7, [#allocation3]  }
   0xc   :  { %84 = dma.done.wait [#allocation3], 256  }
   0xd   :  { %85 = vsyncadd [#allocation3], 4294967040  ;;  %s89_s11 = smov [#allocation5]   ;;  %v21_v0 = vld [vmem:[#allocation2] sm:$0xff]  ;;  %v22_v1 = vld [vmem:[#allocation2 + $0x8] sm:$0xff] }
   0xe   :  { %s33_s12 = sshll.u32 %s89_s11, 4  ;;  %v23_v2 = vand.u32 2147483647, %v21_v0  ;;  %v24_v3 = vand.u32 2147483647, %v22_v1  ;;  %s34_s12 = int_to_ptr.vmem [resolvable:$true] %s33_s12 }
   0xf   :  { %s64_s13 = scalar_lea.vmem %s34_s12, 256  ;;  %p69_p6 = scmp.lt.s32.totalorder %s34_s12, %s34_s12 }
  0x10   :  { %25 = vst [vmem:[#allocation5] sm:$0xff] %v23_v2  ;;  %26 = vst [vmem:[#allocation5 + $0x8] sm:$0xff] %v24_v3  ;;  %p65_p5 = scmp.ne.s32.totalorder %s34_s12, %s64_s13  ;;  %p70_p7 = scmp.lt.s32.totalorder %s64_s13, %s64_s13 }
  0x12   :  { %p71_p8 = por %p70_p7, %p69_p6 }
  0x14   :  { %p72_p9 = pnand %p71_p8, %p65_p5 }
  0x16   :  { %75 = shalt.err (!%p72_p9)
}
  0x17   :  { %36 = dma.vmem_to_hbm [thread:$0]  %s34_s12, 256, %s107_s1, [#allocation4]  }
  0x18   :  { %86 = dma.done.wait [#allocation4], 256  }
  0x19   :  { %87 = vsyncadd [#allocation4], 4294967040 }
  0x1a   :  { %40 = vsyncpa [#allocation3], 1 }
  0x1b   :  { %41 = vsyncpa [#allocation4], 1 }

</bundles_post_ra>
